<compile_context>
chip_gen: v6e
topology: v6e:2x2x1
jax: 0.10.0
libtpu: 0.0.40
codegen_flags: <defaults>
</compile_context>

<pallas_src>
import functools

import jax
import jax.numpy as jnp
from jax.experimental import pallas as pl
from jax.experimental.pallas import tpu as pltpu

_LANE = 128
_VMEM_LIMIT_BYTES = 48 * 1024 * 1024  # fits v7x's 64 MiB physical VMEM


def _round_up(x, m):
    return (x + m - 1) // m * m


def _pick_tile(n_pad):
    for t in (512, 256, 128):
        if n_pad >= t and n_pad % t == 0:
            return t
    return n_pad


# ----------------------------- Pallas kernels -----------------------------

def propagate_kernel(a_ref, x_ref, o_ref, acc_ref):
    """One LightGCN propagation layer: o = A_norm @ x (tiled, f32 accumulate).

    a_ref:   [tm, tk]    bf16 tile of the normalized adjacency
    x_ref:   [tk, E_pad] f32 tile of the current layer's embeddings
    o_ref:   [tm, E_pad] f32 output tile (resident across the k axis)
    acc_ref: [tm, E_pad] f32 VMEM accumulator scratch
    """
    @pl.when(pl.program_id(1) == 0)
    def _():
        acc_ref[...] = jnp.zeros_like(acc_ref)

    acc_ref[...] += jnp.dot(a_ref[...],
                            x_ref[...].astype(jnp.bfloat16),
                            preferred_element_type=jnp.float32)
    o_ref[...] = acc_ref[...]


def edge_score_kernel(n1t_ref, n2t_ref, out_ref):
    """Per-edge dot product + sigmoid with a lane-dense output.

    n1t_ref, n2t_ref: [E_pad, TE] endpoint embeddings (edges on the lane dim)
    out_ref:          [1, TE]     sigmoid(sum_d n1[d, e] * n2[d, e])
    """
    prod = n1t_ref[...] * n2t_ref[...]
    s = jnp.sum(prod, axis=0, keepdims=True)        # [1, TE] sublane reduce
    out_ref[...] = 1.0 / (1.0 + jnp.exp(-s))


# --------------------------- pallas_call wrappers ---------------------------

def _propagate(a_bf16, x):
    n_pad = a_bf16.shape[0]
    e_pad = x.shape[1]
    tm = tk = _pick_tile(n_pad)
    grid = (n_pad // tm, n_pad // tk)
    return pl.pallas_call(
        propagate_kernel,
        out_shape=jax.ShapeDtypeStruct((n_pad, e_pad), jnp.float32),
        grid_spec=pltpu.PrefetchScalarGridSpec(
            num_scalar_prefetch=0,
            grid=grid,
            in_specs=[
                pl.BlockSpec((tm, tk), lambda i, k: (i, k)),
                pl.BlockSpec((tk, e_pad), lambda i, k: (k, 0)),
            ],
            out_specs=pl.BlockSpec((tm, e_pad), lambda i, k: (i, 0)),
            scratch_shapes=[pltpu.VMEM((tm, e_pad), jnp.float32)],
        ),
        compiler_params=pltpu.CompilerParams(
            dimension_semantics=("parallel", "arbitrary"),
            vmem_limit_bytes=_VMEM_LIMIT_BYTES),
    )(a_bf16, x)


def _edge_scores(n1t, n2t):
    e_pad, m_pad = n1t.shape
    te = _LANE
    grid = (m_pad // te,)
    return pl.pallas_call(
        edge_score_kernel,
        out_shape=jax.ShapeDtypeStruct((1, m_pad), jnp.float32),
        grid_spec=pltpu.PrefetchScalarGridSpec(
            num_scalar_prefetch=0,
            grid=grid,
            in_specs=[
                pl.BlockSpec((e_pad, te), lambda t: (0, t)),
                pl.BlockSpec((e_pad, te), lambda t: (0, t)),
            ],
            out_specs=pl.BlockSpec((1, te), lambda t: (0, t)),
        ),
        compiler_params=pltpu.CompilerParams(
            dimension_semantics=("parallel",),
            vmem_limit_bytes=_VMEM_LIMIT_BYTES),
    )(n1t, n2t)


# ------------------------------ JAX wrapper --------------------------------

def build_normalized_adjacency(edge_index, num_nodes, n_pad):
    """Densify the scatter-mean aggregation into a row-normalized adjacency.

    A_norm[t, s] = (#edges s->t) / in_deg(t)  (0 rows for isolated nodes,
    matching torch_scatter mean), zero-padded to [n_pad, n_pad] and cast to
    bf16 for the MXU.  Computed ONCE per graph, not per forward call.
    """
    # TODO(synk): for large graphs, replace the dense O(N^2) adjacency (and
    # the dense matmul) with a CSR segment-sum SpMM kernel using
    # PrefetchScalarGridSpec row offsets.
    src = edge_index[0].astype(jnp.int32)
    tgt = edge_index[1].astype(jnp.int32)
    a_cnt = jnp.zeros((num_nodes, num_nodes), jnp.float32).at[tgt, src].add(1.0)
    deg = jnp.sum(a_cnt, axis=1, keepdims=True)
    a_norm = a_cnt / jnp.maximum(deg, 1.0)
    a_pad = jnp.zeros((n_pad, n_pad), jnp.float32).at[:num_nodes, :num_nodes].set(a_norm)
    return a_pad.astype(jnp.bfloat16)


def lightgcn_forward(a_norm_bf16, emb_weight, edge_label_index, node_label_index,
                     num_layers):
    """Mirrors LightGCN.forward(data); a_norm_bf16 is the precomputed adjacency."""
    n_pad = a_norm_bf16.shape[0]

    # x = self.embeddings(node_label_index)   (glue: gather rows)
    x0 = emb_weight[node_label_index].astype(jnp.float32)    # [N, E]
    n, e = x0.shape
    e_pad = _round_up(e, _LANE)
    x = jnp.zeros((n_pad, e_pad), jnp.float32).at[:n, :e].set(x0)

    # final_emb = x; for each layer: x = conv(x); final_emb += x; then /= L
    final = x
    for _ in range(num_layers):
        x = _propagate(a_norm_bf16, x)      # hot path 1: tiled MXU A @ x
        final = final + x
    final = final / float(num_layers)

    # n1/n2 = index_select(final_emb, 0, edge_label_index[i])  (glue: gather)
    # TODO(synk): fuse this gather + score epilogue into a single pallas_call
    # (scalar-prefetched edge indices) to avoid the final_emb HBM round trip.
    src = edge_label_index[0].astype(jnp.int32)
    dst = edge_label_index[1].astype(jnp.int32)
    m = src.shape[0]
    m_pad = _round_up(m, _LANE)
    src_p = jnp.zeros((m_pad,), jnp.int32).at[:m].set(src)
    dst_p = jnp.zeros((m_pad,), jnp.int32).at[:m].set(dst)
    n1t = final[src_p].T                    # [E_pad, M_pad] (edges on lanes)
    n2t = final[dst_p].T

    scores = _edge_scores(n1t, n2t)         # hot path 2: [1, M_pad] lane-dense
    return scores[0, :m]                    # torch.flatten(pred)


def lightgcn_reference(emb_weight, edge_index, edge_label_index, node_label_index,
                       num_layers, quantize_bf16=False):
    """Pure-JAX reference. quantize_bf16=True mimics the kernel's bf16 MXU inputs."""
    x0 = emb_weight[node_label_index].astype(jnp.float32)
    n = x0.shape[0]
    src = edge_index[0].astype(jnp.int32)
    tgt = edge_index[1].astype(jnp.int32)
    a_cnt = jnp.zeros((n, n), jnp.float32).at[tgt, src].add(1.0)
    deg = jnp.sum(a_cnt, axis=1, keepdims=True)
    a_norm = a_cnt / jnp.maximum(deg, 1.0)
    if quantize_bf16:
        a_norm = a_norm.astype(jnp.bfloat16)

    x = x0
    final = x0
    for _ in range(num_layers):
        if quantize_bf16:
            x = jnp.dot(a_norm, x.astype(jnp.bfloat16),
                        preferred_element_type=jnp.float32)
        else:
            x = a_norm @ x
        final = final + x
    final = final / float(num_layers)

    n1 = final[edge_label_index[0]]
    n2 = final[edge_label_index[1]]
    return jax.nn.sigmoid(jnp.sum(n1 * n2, axis=-1)).reshape(-1)


# --------------------------------- main ------------------------------------

if __name__ == "__main__":
    num_nodes = 32        # total_nodes
    emb_size = 16         # nn.Embedding(total_nodes, emb_size)
    num_layers = 2
    num_edges = 64        # message-passing edges
    num_label_edges = 8   # edges to score

    key = jax.random.PRNGKey(0)
    k_emb, k_ei, k_eli = jax.random.split(key, 3)

    # nn.Embedding default init: N(0, 1)
    emb_weight = jax.random.normal(k_emb, (num_nodes, emb_size), jnp.float32)
    edge_index = jax.random.randint(k_ei, (2, num_edges), 0, num_nodes,
                                    dtype=jnp.int32)
    edge_label_index = jax.random.randint(k_eli, (2, num_label_edges), 0,
                                          num_nodes, dtype=jnp.int32)
    node_label_index = jnp.arange(num_nodes, dtype=jnp.int32)

    # Adjacency is a function of the (static) graph: build once, reuse.
    n_pad = _round_up(num_nodes, _LANE)
    a_norm_bf16 = build_normalized_adjacency(edge_index, num_nodes, n_pad)
    a_norm_bf16 = jax.block_until_ready(a_norm_bf16)

    fwd = jax.jit(functools.partial(lightgcn_forward, num_layers=num_layers))
    pred = fwd(a_norm_bf16, emb_weight, edge_label_index, node_label_index)
    pred = jax.block_until_ready(pred)

    ref_bf16 = lightgcn_reference(emb_weight, edge_index, edge_label_index,
                                  node_label_index, num_layers,
                                  quantize_bf16=True)
    ref_f32 = lightgcn_reference(emb_weight, edge_index, edge_label_index,
                                 node_label_index, num_layers,
                                 quantize_bf16=False)
    ref_bf16 = jax.block_until_ready(ref_bf16)
    ref_f32 = jax.block_until_ready(ref_f32)

    assert pred.shape == (num_label_edges,)
    # Strict check vs a reference using the same bf16 MXU inputs.
    assert jnp.allclose(pred, ref_bf16, atol=1e-4, rtol=1e-4), (pred, ref_bf16)
    # Loose check vs the full-f32 reference (bf16 A costs ~3 decimal digits).
    assert jnp.allclose(pred, ref_f32, atol=5e-2, rtol=5e-2), (pred, ref_f32)

    print("KERNEL_OK")
</pallas_src>

<mosaic_0001>
module attributes {stable_mosaic.version = 11 : i64} {
  func.func @propagate_kernel(%arg0: i32, %arg1: i32, %arg2: memref<128x128xbf16, #tpu.memory_space<vmem>>, %arg3: memref<128x128xf32, #tpu.memory_space<vmem>>, %arg4: memref<128x128xf32, #tpu.memory_space<vmem>>, %arg5: memref<128x128xf32, #tpu.memory_space<vmem>>) attributes {dimension_semantics = [#tpu.dimension_semantics<parallel>, #tpu.dimension_semantics<arbitrary>], iteration_bounds = array<i64: 1, 1>, scalar_prefetch = 0 : i64, scratch_operands = 1 : i64, tpu.core_type = #tpu.core_type<tc>, window_params = [{transform_indices = @transform_0, window_bounds = array<i64: 128, 128>}, {transform_indices = @transform_1, window_bounds = array<i64: 128, 128>}, {transform_indices = @transform_2, window_bounds = array<i64: 128, 128>}]} {
    %c0_i32 = arith.constant 0 : i32
    %0 = arith.cmpi eq, %arg1, %c0_i32 : i32
    %1 = arith.extui %0 : i1 to i32
    %c0_i32_0 = arith.constant 0 : i32
    %2 = arith.cmpi ne, %1, %c0_i32_0 : i32
    scf.if %2 {
      %cst_12 = arith.constant 0.000000e+00 : f32
      %12 = vector.broadcast %cst_12 : f32 to vector<128x128xf32>
      %c0_13 = arith.constant 0 : index
      %c0_14 = arith.constant 0 : index
      %13 = vector.load %arg5[%c0_13, %c0_14] : memref<128x128xf32, #tpu.memory_space<vmem>>, vector<128x128xf32>
      tpu.vector_store %arg5[%c0_13, %c0_14], %12 {strides = array<i32>} : memref<128x128xf32, #tpu.memory_space<vmem>>, vector<128x128xf32>,
    } else {
    }
    %c0 = arith.constant 0 : index
    %c0_1 = arith.constant 0 : index
    %3 = vector.load %arg5[%c0, %c0_1] : memref<128x128xf32, #tpu.memory_space<vmem>>, vector<128x128xf32>
    %c0_2 = arith.constant 0 : index
    %c0_3 = arith.constant 0 : index
    %4 = vector.load %arg2[%c0_2, %c0_3] : memref<128x128xbf16, #tpu.memory_space<vmem>>, vector<128x128xbf16>
    %c0_4 = arith.constant 0 : index
    %c0_5 = arith.constant 0 : index
    %5 = vector.load %arg3[%c0_4, %c0_5] : memref<128x128xf32, #tpu.memory_space<vmem>>, vector<128x128xf32>
    %6 = arith.truncf %5 : vector<128x128xf32> to vector<128x128xbf16>
    %cst = arith.constant dense<0.000000e+00> : vector<128x128xf32>
    %7 = tpu.matmul %4, %6, %cst {dimension_numbers = #tpu.dot_dimension_numbers<[1], [0], [0], [1], [0, 0, 1, 1], [], []>} : vector<128x128xbf16>, vector<128x128xbf16>, vector<128x128xf32> -> vector<128x128xf32>
    %8 = arith.addf %3, %7 : vector<128x128xf32>
    %c0_6 = arith.constant 0 : index
    %c0_7 = arith.constant 0 : index
    %9 = vector.load %arg5[%c0_6, %c0_7] : memref<128x128xf32, #tpu.memory_space<vmem>>, vector<128x128xf32>
    tpu.vector_store %arg5[%c0_6, %c0_7], %8 {strides = array<i32>} : memref<128x128xf32, #tpu.memory_space<vmem>>, vector<128x128xf32>,
    %c0_8 = arith.constant 0 : index
    %c0_9 = arith.constant 0 : index
    %10 = vector.load %arg5[%c0_8, %c0_9] : memref<128x128xf32, #tpu.memory_space<vmem>>, vector<128x128xf32>
    %c0_10 = arith.constant 0 : index
    %c0_11 = arith.constant 0 : index
    %11 = vector.load %arg4[%c0_10, %c0_11] : memref<128x128xf32, #tpu.memory_space<vmem>>, vector<128x128xf32>
    tpu.vector_store %arg4[%c0_10, %c0_11], %10 {strides = array<i32>} : memref<128x128xf32, #tpu.memory_space<vmem>>, vector<128x128xf32>,
    return
  }
  func.func @transform_0(%arg0: i32, %arg1: i32) -> (i32, i32) {
    %c0_i32 = arith.constant 0 : i32
    return %arg0, %arg1 : i32, i32
  }
  func.func @transform_1(%arg0: i32, %arg1: i32) -> (i32, i32) {
    %c0_i32 = arith.constant 0 : i32
    %c0_i32_0 = arith.constant 0 : i32
    return %arg1, %c0_i32 : i32, i32
  }
  func.func @transform_2(%arg0: i32, %arg1: i32) -> (i32, i32) {
    %c0_i32 = arith.constant 0 : i32
    %c0_i32_0 = arith.constant 0 : i32
    return %arg0, %c0_i32 : i32, i32
  }
}

module attributes {stable_mosaic.version = 11 : i64} {
  func.func @edge_score_kernel(%arg0: i32, %arg1: memref<128x128xf32, #tpu.memory_space<vmem>>, %arg2: memref<128x128xf32, #tpu.memory_space<vmem>>, %arg3: memref<1x128xf32, #tpu.memory_space<vmem>>) attributes {dimension_semantics = [#tpu.dimension_semantics<parallel>], iteration_bounds = array<i64: 1>, scalar_prefetch = 0 : i64, scratch_operands = 0 : i64, tpu.core_type = #tpu.core_type<tc>, window_params = [{transform_indices = @transform_0, window_bounds = array<i64: 128, 128>}, {transform_indices = @transform_1, window_bounds = array<i64: 128, 128>}, {transform_indices = @transform_2, window_bounds = array<i64: 1, 128>}]} {
    %c0 = arith.constant 0 : index
    %c0_0 = arith.constant 0 : index
    %0 = vector.load %arg1[%c0, %c0_0] : memref<128x128xf32, #tpu.memory_space<vmem>>, vector<128x128xf32>
    %c0_1 = arith.constant 0 : index
    %c0_2 = arith.constant 0 : index
    %1 = vector.load %arg2[%c0_1, %c0_2] : memref<128x128xf32, #tpu.memory_space<vmem>>, vector<128x128xf32>
    %2 = arith.mulf %0, %1 : vector<128x128xf32>
    %cst = arith.constant dense<0.000000e+00> : vector<128xf32>
    %3 = vector.multi_reduction <add>, %2, %cst [0] : vector<128x128xf32> to vector<128xf32>
    %4 = vector.shape_cast %3 : vector<128xf32> to vector<1x128xf32>
    %cst_3 = arith.constant 0.000000e+00 : f32
    %5 = vector.broadcast %cst_3 : f32 to vector<1x128xf32>
    %6 = arith.subf %5, %4 : vector<1x128xf32>
    %7 = math.exp %6 : vector<1x128xf32>
    %cst_4 = arith.constant 1.000000e+00 : f32
    %8 = vector.broadcast %cst_4 : f32 to vector<1x128xf32>
    %9 = arith.addf %8, %7 : vector<1x128xf32>
    %cst_5 = arith.constant 1.000000e+00 : f32
    %10 = vector.broadcast %cst_5 : f32 to vector<1x128xf32>
    %11 = arith.divf %10, %9 : vector<1x128xf32>
    %c0_6 = arith.constant 0 : index
    %c0_7 = arith.constant 0 : index
    %12 = vector.load %arg3[%c0_6, %c0_7] : memref<1x128xf32, #tpu.memory_space<vmem>>, vector<1x128xf32>
    tpu.vector_store %arg3[%c0_6, %c0_7], %11 {strides = array<i32>} : memref<1x128xf32, #tpu.memory_space<vmem>>, vector<1x128xf32>,
    return
  }
  func.func @transform_0(%arg0: i32) -> (i32, i32) {
    %c0_i32 = arith.constant 0 : i32
    %c0_i32_0 = arith.constant 0 : i32
    return %c0_i32, %arg0 : i32, i32
  }
  func.func @transform_1(%arg0: i32) -> (i32, i32) {
    %c0_i32 = arith.constant 0 : i32
    %c0_i32_0 = arith.constant 0 : i32
    return %c0_i32, %arg0 : i32, i32
  }
  func.func @transform_2(%arg0: i32) -> (i32, i32) {
    %c0_i32 = arith.constant 0 : i32
    %c0_i32_0 = arith.constant 0 : i32
    return %c0_i32, %arg0 : i32, i32
  }
}

</mosaic_0001>

<bundles_post_ra>
// kernel: lightgcn_forward.5
= control target key start
LH: loop header
LB: loop body
LE: loop exit
PB: predicated region body
PF: predicated region fallthrough
CT: control target
= control target key end

     0   :  { %s209_s0 = inlined_call_operand.vmem [shape: f32[128,128], index: 0, kind: input, shape index: {}]   ;;  %s210_s1 = inlined_call_operand.vmem [shape: f32[128,128], index: 1, kind: input, shape index: {}]   ;;  %s211_s2 = inlined_call_operand.vmem [shape: f32[1,128], index: 2, kind: output, shape index: {}]  }
   0x1   :  { %v11_v0 = vld [vmem:[%s209_s0] sm:$0xff]  ;;  %v12_v1 = vld [vmem:[%s209_s0 + $0x8] sm:$0xff]  ;;  %v13_v2 = vld [vmem:[%s209_s0 + $0x10] sm:$0xff] }
   0x2   :  { %v14_v3 = vld [vmem:[%s209_s0 + $0x18] sm:$0xff]  ;;  %v27_v4 = vld [vmem:[%s210_s1] sm:$0xff]  ;;  %v28_v5 = vld [vmem:[%s210_s1 + $0x8] sm:$0xff] }
   0x3   :  { %v29_v6 = vld [vmem:[%s210_s1 + $0x10] sm:$0xff]  ;;  %v30_v7 = vld [vmem:[%s210_s1 + $0x18] sm:$0xff]  ;;  %v43_v8 = vmul.f32 %v27_v4, %v11_v0  ;;  %v44_v9 = vmul.f32 %v28_v5, %v12_v1  ;;  %v15_v10 = vld [vmem:[%s209_s0 + $0x20] sm:$0xff] }
   0x4   :  { %v31_v11 = vld [vmem:[%s210_s1 + $0x20] sm:$0xff]  ;;  %v45_v12 = vmul.f32 %v29_v6, %v13_v2  ;;  %v46_v13 = vmul.f32 %v30_v7, %v14_v3  ;;  %v16_v15 = vld [vmem:[%s209_s0 + $0x28] sm:$0xff]  ;;  %v17_v19 = vld [vmem:[%s209_s0 + $0x30] sm:$0xff] }
   0x5   :  { %v59_v14 = vadd.f32 %v44_v9, %v43_v8  ;;  %v32_v16 = vld [vmem:[%s210_s1 + $0x28] sm:$0xff]  ;;  %v47_v17 = vmul.f32 %v31_v11, %v15_v10  ;;  %v33_v20 = vld [vmem:[%s210_s1 + $0x30] sm:$0xff]  ;;  %v18_v23 = vld [vmem:[%s209_s0 + $0x38] sm:$0xff] }
   0x6   :  { %v48_v21 = vmul.f32 %v32_v16, %v16_v15  ;;  %v34_v24 = vld [vmem:[%s210_s1 + $0x38] sm:$0xff]  ;;  %v49_v25 = vmul.f32 %v33_v20, %v17_v19  ;;  %v19_v27 = vld [vmem:[%s209_s0 + $0x40] sm:$0xff]  ;;  %v20_v31 = vld [vmem:[%s209_s0 + $0x48] sm:$0xff] }
   0x7   :  { %v60_v18 = vadd.f32 %v59_v14, %v45_v12  ;;  %v35_v28 = vld [vmem:[%s210_s1 + $0x40] sm:$0xff]  ;;  %v50_v29 = vmul.f32 %v34_v24, %v18_v23  ;;  %v36_v32 = vld [vmem:[%s210_s1 + $0x48] sm:$0xff]  ;;  %v21_v35 = vld [vmem:[%s209_s0 + $0x50] sm:$0xff] }
   0x8   :  { %v51_v33 = vmul.f32 %v35_v28, %v19_v27  ;;  %v37_v36 = vld [vmem:[%s210_s1 + $0x50] sm:$0xff]  ;;  %v52_v37 = vmul.f32 %v36_v32, %v20_v31  ;;  %v22_v39 = vld [vmem:[%s209_s0 + $0x58] sm:$0xff]  ;;  %v23_v43 = vld [vmem:[%s209_s0 + $0x60] sm:$0xff] }
   0x9   :  { %v61_v22 = vadd.f32 %v60_v18, %v46_v13  ;;  %v38_v40 = vld [vmem:[%s210_s1 + $0x58] sm:$0xff]  ;;  %v53_v41 = vmul.f32 %v37_v36, %v21_v35  ;;  %v39_v44 = vld [vmem:[%s210_s1 + $0x60] sm:$0xff]  ;;  %v24_v47 = vld [vmem:[%s209_s0 + $0x68] sm:$0xff] }
   0xa   :  { %v54_v45 = vmul.f32 %v38_v40, %v22_v39  ;;  %v40_v48 = vld [vmem:[%s210_s1 + $0x68] sm:$0xff]  ;;  %v55_v49 = vmul.f32 %v39_v44, %v23_v43  ;;  %v25_v51 = vld [vmem:[%s209_s0 + $0x70] sm:$0xff]  ;;  %v26_v55 = vld [vmem:[%s209_s0 + $0x78] sm:$0xff] }
   0xb   :  { %v62_v26 = vadd.f32 %v61_v22, %v47_v17  ;;  %v41_v52 = vld [vmem:[%s210_s1 + $0x70] sm:$0xff]  ;;  %v56_v53 = vmul.f32 %v40_v48, %v24_v47  ;;  %v42_v56 = vld [vmem:[%s210_s1 + $0x78] sm:$0xff] }
   0xc   :  { %v57_v57 = vmul.f32 %v41_v52, %v25_v51  ;;  %v58_v59 = vmul.f32 %v42_v56, %v26_v55 }
   0xd   :  { %v63_v30 = vadd.f32 %v62_v26, %v48_v21 }
   0xf   :  { %v64_v34 = vadd.f32 %v63_v30, %v49_v25 }
  0x11   :  { %v65_v38 = vadd.f32 %v64_v34, %v50_v29 }
  0x13   :  { %v66_v42 = vadd.f32 %v65_v38, %v51_v33 }
  0x15   :  { %v67_v46 = vadd.f32 %v66_v42, %v52_v37 }
  0x17   :  { %v68_v50 = vadd.f32 %v67_v46, %v53_v41 }
  0x19   :  { %v69_v54 = vadd.f32 %v68_v50, %v54_v45 }
  0x1b   :  { %v70_v58 = vadd.f32 %v69_v54, %v55_v49 }
  0x1d   :  { %v71_v60 = vadd.f32 %v70_v58, %v56_v53 }
  0x1f   :  { %v72_v61 = vadd.f32 %v71_v60, %v57_v57 }
  0x21   :  { %v73_v62 = vadd.f32 %v72_v61, %v58_v59 }
  0x23   :  { %v74_v63 = vrot.slane %v73_v62, 4 }
  0x25   :  { %v75_v0 = vadd.f32 %v74_v63, %v73_v62 }
  0x27   :  { %v76_v1 = vrot.slane %v75_v0, 2 }
  0x29   :  { %v77_v2 = vadd.f32 %v76_v1, %v75_v0 }
  0x2b   :  { %v78_v3 = vrot.slane %v77_v2, 1 }
  0x2d   :  { %v79_v4 = vadd.f32 %v78_v3, %v77_v2 }
  0x2f   :  { %v80_v5 = vsub.f32 0.0, %v79_v4 }
  0x31   :  { %v81_v6 = vmul.f32 1.442695, %v80_v5 }
  0x33   :  { %91 = vpow2.f32 %v81_v6 }
  0x40   :  { %v92_v7 = vpop.eup %91 }
  0x41   :  { %v83_v8 = vadd.f32 1.0, %v92_v7 }
  0x43   :  { %93 = vrcp.f32 %v83_v8 }
  0x50   :  { %v94_v9 = vpop.eup %93 }
  0x51   :  { %86 = vst [vmem:[%s211_s2] sm:$0x1] %v94_v9 }

// kernel: lightgcn_forward.3
= control target key start
LH: loop header
LB: loop body
LE: loop exit
PB: predicated region body
PF: predicated region fallthrough
CT: control target
= control target key end

     0   :  { %s516_s1 = inlined_call_operand.vmem [shape: f32[128,128], index: 1, kind: input, shape index: {}]   ;;  %s517_s0 = inlined_call_operand.vmem [shape: bf16[128,128], index: 0, kind: input, shape index: {}]   ;;  %s518_s2 = inlined_call_operand.vmem [shape: f32[128,128], index: 2, kind: output, shape index: {}]  }
   0x1   :  { %v78_v0 = vld [vmem:[%s516_s1 + $0x70] sm:$0xff]  ;;  %v79_v1 = vld [vmem:[%s516_s1 + $0x78] sm:$0xff]  ;;  %v76_v2 = vld [vmem:[%s516_s1 + $0x60] sm:$0xff] }
   0x2   :  { %v87_v3 = vpack.c.bf16 %v79_v1, %v78_v0  ;;  %v77_v4 = vld [vmem:[%s516_s1 + $0x68] sm:$0xff]  ;;  %v74_v6 = vld [vmem:[%s516_s1 + $0x50] sm:$0xff]  ;;  %v75_v7 = vld [vmem:[%s516_s1 + $0x58] sm:$0xff] }
   0x3   :  { %v86_v5 = vpack.c.bf16 %v77_v4, %v76_v2  ;;  %v72_v8 = vld [vmem:[%s516_s1 + $0x40] sm:$0xff]  ;;  %v85_v9 = vpack.c.bf16 %v75_v7, %v74_v6  ;;  %v73_v10 = vld [vmem:[%s516_s1 + $0x48] sm:$0xff]  ;;  %v70_v14 = vld [vmem:[%s516_s1 + $0x30] sm:$0xff] }
   0x4   :  { %325 = vmatprep.subr.bf16.mxu0 %v87_v3  ;;  %357 = vmatprep.subr.bf16.mxu1 %v87_v3  ;;  %v373_v11 = vld [vmem:[%s517_s0] sm:$0xff]   ;;  %v84_v13 = vpack.c.bf16 %v73_v10, %v72_v8  ;;  %v71_v15 = vld [vmem:[%s516_s1 + $0x38] sm:$0xff]  ;;  %v69_v18 = vld [vmem:[%s516_s1 + $0x28] sm:$0xff] }
   0x5   :  { %326 = vmatpush3.bf16.msra.mxu0 %v87_v3  ;;  %365 = vmatpush3.bf16.msra.mxu1 %v87_v3  ;;  %v374_v12 = vld [vmem:[%s517_s0 + $0x20] sm:$0xff]   ;;  %v83_v16 = vpack.c.bf16 %v71_v15, %v70_v14  ;;  %v66_v20 = vld [vmem:[%s516_s1 + $0x10] sm:$0xff]  ;;  %v67_v21 = vld [vmem:[%s516_s1 + $0x18] sm:$0xff] }
   0x6   :  { %327 = vmatprep.subr.bf16.mxu0 %v86_v5  ;;  %358 = vmatprep.subr.bf16.mxu1 %v86_v5  ;;  %v68_v17 = vld [vmem:[%s516_s1 + $0x20] sm:$0xff]  ;;  %v81_v22 = vpack.c.bf16 %v67_v21, %v66_v20  ;;  %v65_v24 = vld [vmem:[%s516_s1 + $0x8] sm:$0xff]  ;;  %v377_v28 = vld [vmem:[%s517_s0 + $0x10] sm:$0xff]  }
   0x7   :  { %341 = vmatprep.mubr.bf16.mxu0 %v373_v11  ;;  %349 = vmatprep.mubr.bf16.mxu1 %v374_v12  ;;  %v82_v19 = vpack.c.bf16 %v69_v18, %v68_v17  ;;  %v64_v23 = vld [vmem:[%s516_s1] sm:$0xff]  ;;  %v375_v26 = vld [vmem:[%s517_s0 + $0x8] sm:$0xff]   ;;  %v378_v29 = vld [vmem:[%s517_s0 + $0x30] sm:$0xff]  }
   0x8   :  { %v80_v25 = vpack.c.bf16 %v65_v24, %v64_v23  ;;  %v376_v27 = vld [vmem:[%s517_s0 + $0x28] sm:$0xff]   ;;  %v379_v30 = vld [vmem:[%s517_s0 + $0x18] sm:$0xff]  }
   0x9   :  { %328 = vmatpush3.bf16.msra.mxu0 %v86_v5  ;;  %366 = vmatpush3.bf16.msra.mxu1 %v86_v5  ;;  %v380_v31 = vld [vmem:[%s517_s0 + $0x38] sm:$0xff]  }
   0xa   :  { %329 = vmatprep.subr.bf16.mxu0 %v85_v9  ;;  %359 = vmatprep.subr.bf16.mxu1 %v85_v9 }
   0xd   :  { %330 = vmatpush3.bf16.msra.mxu0 %v85_v9  ;;  %367 = vmatpush3.bf16.msra.mxu1 %v85_v9 }
   0xe   :  { %331 = vmatprep.subr.bf16.mxu0 %v84_v13  ;;  %360 = vmatprep.subr.bf16.mxu1 %v84_v13 }
  0x11   :  { %332 = vmatpush3.bf16.msra.mxu0 %v84_v13  ;;  %368 = vmatpush3.bf16.msra.mxu1 %v84_v13 }
  0x12   :  { %333 = vmatprep.subr.bf16.mxu0 %v83_v16  ;;  %361 = vmatprep.subr.bf16.mxu1 %v83_v16 }
  0x15   :  { %334 = vmatpush3.bf16.msra.mxu0 %v83_v16  ;;  %369 = vmatpush3.bf16.msra.mxu1 %v83_v16 }
  0x16   :  { %335 = vmatprep.subr.bf16.mxu0 %v82_v19  ;;  %362 = vmatprep.subr.bf16.mxu1 %v82_v19 }
  0x19   :  { %336 = vmatpush3.bf16.msra.mxu0 %v82_v19  ;;  %370 = vmatpush3.bf16.msra.mxu1 %v82_v19 }
  0x1a   :  { %337 = vmatprep.subr.bf16.mxu0 %v81_v22  ;;  %363 = vmatprep.subr.bf16.mxu1 %v81_v22 }
  0x1d   :  { %338 = vmatpush3.bf16.msra.mxu0 %v81_v22  ;;  %371 = vmatpush3.bf16.msra.mxu1 %v81_v22 }
  0x1e   :  { %339 = vmatprep.subr.bf16.mxu0 %v80_v25  ;;  %364 = vmatprep.subr.bf16.mxu1 %v80_v25 }
  0x21   :  { %340 = vmatpush3.bf16.msra.mxu0 %v80_v25  ;;  %372 = vmatpush3.bf16.msra.mxu1 %v80_v25 }
  0x24   :  { %342 = vmatmul.mubr.bf16.vlgmr.msra.gmra.mxu0 %v375_v26  ;;  %350 = vmatmul.mubr.bf16.vlgmr.msra.gmra.mxu1 %v376_v27 }
  0x25   :  { %345 = vmatprep.mubr.bf16.mxu0 %v377_v28  ;;  %353 = vmatprep.mubr.bf16.mxu1 %v378_v29 }
  0x2c   :  { %346 = vmatmul.mubr.bf16.gmra.mxu0 %v379_v30  ;;  %354 = vmatmul.mubr.bf16.gmra.mxu1 %v380_v31 }
  0xe4   :  { %v343_v32 = vpop.f32.mrf.mxu0  ;;  %v351_v33 = vpop.f32.mrf.mxu1 }
  0xe5   :  { %283 = vst [vmem:[%s518_s2 + $0x10] sm:$0xff] %v343_v32  ;;  %291 = vst [vmem:[%s518_s2 + $0x50] sm:$0xff] %v351_v33 }
  0xe6   :  { %v170_v34 = vpop.f32.mrf.mxu0  ;;  %v202_v35 = vpop.f32.mrf.mxu1 }
  0xe7   :  { %281 = vst [vmem:[%s518_s2] sm:$0xff] %v170_v34  ;;  %289 = vst [vmem:[%s518_s2 + $0x40] sm:$0xff] %v202_v35 }
  0xe8   :  { %v344_v36 = vpop.f32.mrf.mxu0  ;;  %v352_v37 = vpop.f32.mrf.mxu1 }
  0xe9   :  { %284 = vst [vmem:[%s518_s2 + $0x18] sm:$0xff] %v344_v36  ;;  %292 = vst [vmem:[%s518_s2 + $0x58] sm:$0xff] %v352_v37 }
  0xea   :  { %v173_v38 = vpop.f32.mrf.mxu0  ;;  %v205_v39 = vpop.f32.mrf.mxu1 }
  0xeb   :  { %282 = vst [vmem:[%s518_s2 + $0x8] sm:$0xff] %v173_v38  ;;  %290 = vst [vmem:[%s518_s2 + $0x48] sm:$0xff] %v205_v39 }
  0xec   :  { %v347_v40 = vpop.f32.mrf.mxu0  ;;  %v355_v41 = vpop.f32.mrf.mxu1 }
  0xed   :  { %287 = vst [vmem:[%s518_s2 + $0x30] sm:$0xff] %v347_v40  ;;  %295 = vst [vmem:[%s518_s2 + $0x70] sm:$0xff] %v355_v41 }
  0xee   :  { %v186_v42 = vpop.f32.mrf.mxu0  ;;  %v218_v43 = vpop.f32.mrf.mxu1 }
  0xef   :  { %285 = vst [vmem:[%s518_s2 + $0x20] sm:$0xff] %v186_v42  ;;  %293 = vst [vmem:[%s518_s2 + $0x60] sm:$0xff] %v218_v43 }
  0xf0   :  { %v348_v44 = vpop.f32.mrf.mxu0  ;;  %v356_v45 = vpop.f32.mrf.mxu1 }
  0xf1   :  { %288 = vst [vmem:[%s518_s2 + $0x38] sm:$0xff] %v348_v44  ;;  %296 = vst [vmem:[%s518_s2 + $0x78] sm:$0xff] %v356_v45 }
  0xf2   :  { %v189_v46 = vpop.f32.mrf.mxu0  ;;  %v221_v47 = vpop.f32.mrf.mxu1 }
  0xf3   :  { %286 = vst [vmem:[%s518_s2 + $0x28] sm:$0xff] %v189_v46  ;;  %294 = vst [vmem:[%s518_s2 + $0x68] sm:$0xff] %v221_v47 }

</bundles_post_ra>
